<compile_context>
chip_gen: v5e
topology: v5e:2x2
jax: 0.10.0
libtpu: 0.0.40
codegen_flags: <defaults>
</compile_context>

<pallas_src>
import numpy as np
import jax
import jax.numpy as jnp
from jax.experimental import pallas as pl
from jax.experimental.pallas import tpu as pltpu

# ----------------------------------------------------------------------------
# Hadamard transform constants (from the PyTorch source).
# ----------------------------------------------------------------------------
_HMT = np.array([[1, 1, 1, 1],
                 [1, -1, 1, -1],
                 [1, 1, -1, -1],
                 [1, -1, -1, 1]], dtype=np.float32)
_HMT2 = _HMT[[1, 0, 2, 3], :]
_HMT3 = _HMT[[3, 1, 2, 0], :]

# TODO(synk): the reference source uses _IHMT/_IHMT2/_IHMT3 before defining
# them (`_IHMT = _IHMT[1:3, :]`).  Reconstructed here as the inverse Hadamard
# transforms, rows 1:3 of inv(H*), matching the (2, 4) shapes the forward
# pass implies.  If the original constants differ, results differ too.
_IHMT = np.linalg.inv(_HMT).astype(np.float32)[1:3, :]     # (2, 4)
_IHMT2 = np.linalg.inv(_HMT2).astype(np.float32)[1:3, :]   # (2, 4)
_IHMT3 = np.linalg.inv(_HMT3).astype(np.float32)[1:3, :]   # (2, 4)

# Flattened transforms acting on flattened 4x4 patches:
#   patch index  k  = jw*4 + ih,   transform index uv = u*4 + v,
#   output index ab = a*2 + b.
_AT1 = np.kron(_HMT, _HMT.T).astype(np.float32)       # H    @ P @ H
_AT2 = np.kron(_HMT2.T, _HMT2.T).astype(np.float32)   # H2.T @ P @ H2
_AT3 = np.kron(_HMT3.T, _HMT3.T).astype(np.float32)   # H3.T @ P @ H3
_BT1 = np.kron(_IHMT, _IHMT).astype(np.float32)       # IH  @ M @ IH.T   (4, 16)
_BT2 = np.kron(_IHMT2, _IHMT2).astype(np.float32)     # IH2 @ M @ IH2.T  (4, 16)
_BT3 = np.kron(_IHMT3, _IHMT3).astype(np.float32)     # IH3 @ M @ IH3.T  (4, 16)


# ----------------------------------------------------------------------------
# Pallas kernel: one streaming MXU matmul per (batch, spatial-tile) grid step.
# ----------------------------------------------------------------------------
def _mult_kernel(p_ref, m_ref, bias_ref, out_ref):
    # p_ref    : (16*C, Tt)   flattened patches for this (batch, T-tile)
    # m_ref    : (4*O, 16*C)  folded BT @ diag(w) @ AT matrix (VMEM resident)
    # bias_ref : (4*O, 1)     per-row bias
    # out_ref  : (4*O, Tt)    lane-dense output tile (single full-block store)
    y = jnp.dot(m_ref[...], p_ref[...], preferred_element_type=jnp.float32)
    out_ref[...] = (y + bias_ref[...]).astype(out_ref.dtype)


# ----------------------------------------------------------------------------
# Wrapper: patch extraction, transform folding, tiling, tile re-assembly.
# ----------------------------------------------------------------------------
def mult_layer3_forward(x, weight, bias, *, kernel_size=4, stride=2,
                        block_t=None):
    B, C, ih, iw = x.shape
    O = weight.shape[0]
    nH, nW = ih // stride, iw // stride
    T = nH * nW

    # ---- glue: extract patches directly in (B, C*16, T) order --------------
    xp = jnp.pad(x, ((0, 0), (0, 0), (1, 1), (1, 1)))
    slices = []
    for jw in range(kernel_size):
        for ihh in range(kernel_size):
            slices.append(xp[:, :, ihh:ihh + stride * nH:stride,
                                    jw:jw + stride * nW:stride])  # (B,C,nH,nW)
    p = jnp.stack(slices, axis=2)                  # (B, C, 16, nH, nW), k=jw*4+ih
    p = p.reshape(B, C * 16, T)                    # rows = c*16 + k (cheap merge)

    # ---- fold forward transform, weights, inverse transform into M ---------
    o1 = O // 3
    ats = (jnp.asarray(_AT1), jnp.asarray(_AT2), jnp.asarray(_AT3))
    bts = (jnp.asarray(_BT1), jnp.asarray(_BT2), jnp.asarray(_BT3))
    groups = (weight[:o1], weight[o1:2 * o1], weight[2 * o1:])
    m_blocks = []
    for wg, a, binv in zip(groups, ats, bts):
        og = wg.shape[0]
        wf = wg.reshape(og, C, 16)                              # uv = u*4 + v
        mg = jnp.einsum('pu,ocu,uk->opck', binv, wf, a)         # (og, 4, C, 16)
        m_blocks.append(mg.reshape(og * 4, C * 16))
    M = jnp.concatenate(m_blocks, axis=0)                       # (4*O, 16*C)

    bvec = jnp.repeat(bias.reshape(O), 4).reshape(4 * O, 1)     # rows = o*4 + ab

    # ---- choose spatial tile (multiple of 128, bounded VMEM) ----------------
    if block_t is None:
        vmem_budget = 20 << 20                     # double-buffered p/out tiles
        per_lane = 2 * (16 * C + 4 * O) * 4        # 2 buffers each, f32 bytes
        block_t = max(128, min(2048, (vmem_budget // per_lane) // 128 * 128))
    t_aligned = ((T + 127) // 128) * 128
    block_t = min(block_t, t_aligned)
    t_pad = ((T + block_t - 1) // block_t) * block_t
    if t_pad != T:
        p = jnp.pad(p, ((0, 0), (0, 0), (0, t_pad - T)))

    grid = (B, t_pad // block_t)
    cost = pl.CostEstimate(
        flops=2 * B * t_pad * (4 * O) * (16 * C),
        transcendentals=0,
        bytes_accessed=4 * (B * 16 * C * t_pad + B * 4 * O * t_pad
                            + 4 * O * 16 * C + 4 * O),
    )

    out = pl.pallas_call(
        _mult_kernel,
        out_shape=jax.ShapeDtypeStruct((B, 4 * O, t_pad), jnp.float32),
        grid=grid,
        in_specs=[
            pl.BlockSpec((None, 16 * C, block_t), lambda b, t: (b, 0, t)),
            pl.BlockSpec((4 * O, 16 * C), lambda b, t: (0, 0)),   # VMEM resident
            pl.BlockSpec((4 * O, 1), lambda b, t: (0, 0)),        # VMEM resident
        ],
        out_specs=pl.BlockSpec((None, 4 * O, block_t), lambda b, t: (b, 0, t)),
        compiler_params=pltpu.CompilerParams(
            dimension_semantics=("parallel", "parallel"),
            vmem_limit_bytes=48 << 20),
        cost_estimate=cost,
    )(p, M, bvec)

    # ---- glue: re-assemble 2x2 output tiles into the NCHW image ------------
    y = out[:, :, :T].reshape(B, O, 2, 2, nH, nW)       # (b, o, a, bb, th, tw)
    y = jnp.transpose(y, (0, 1, 4, 2, 5, 3)).reshape(B, O, ih, iw)
    return y


# ----------------------------------------------------------------------------
# Pure-JAX reference (direct transcription of the PyTorch forward, 3 groups).
# ----------------------------------------------------------------------------
def mult_layer3_reference(x, weight, bias):
    B, C, ih, iw = x.shape
    O = weight.shape[0]
    o1 = O // 3
    nH, nW = ih // 2, iw // 2
    xp = jnp.pad(x, ((0, 0), (0, 0), (1, 1), (1, 1)))
    cols = []
    for jw in range(4):
        rows = [xp[:, :, r:r + 2 * nH:2, jw:jw + 2 * nW:2] for r in range(4)]
        cols.append(jnp.stack(rows, axis=-1))
    P = jnp.stack(cols, axis=-2)               # (B, C, nH, nW, 4(jw), 4(ih))
    H, H2, H3 = jnp.asarray(_HMT), jnp.asarray(_HMT2), jnp.asarray(_HMT3)
    IH, IH2, IH3 = jnp.asarray(_IHMT), jnp.asarray(_IHMT2), jnp.asarray(_IHMT3)
    u1 = jnp.einsum('uj,nchwji,iv->nchwuv', H, P, H)
    u2 = jnp.einsum('ju,nchwji,iv->nchwuv', H2, P, H2)
    u3 = jnp.einsum('ju,nchwji,iv->nchwuv', H3, P, H3)
    m1 = jnp.einsum('nchwuv,ocuv->nohwuv', u1, weight[:o1])
    m2 = jnp.einsum('nchwuv,ocuv->nohwuv', u2, weight[o1:2 * o1])
    m3 = jnp.einsum('nchwuv,ocuv->nohwuv', u3, weight[2 * o1:])
    y1 = jnp.einsum('pu,nohwuv,qv->nohwpq', IH, m1, IH)
    y2 = jnp.einsum('pu,nohwuv,qv->nohwpq', IH2, m2, IH2)
    y3 = jnp.einsum('pu,nohwuv,qv->nohwpq', IH3, m3, IH3)
    y = jnp.concatenate([y1, y2, y3], axis=1)   # (B, O, nH, nW, 2, 2)
    y = jnp.transpose(y, (0, 1, 2, 4, 3, 5)).reshape(B, O, ih, iw)
    return y + bias


if __name__ == "__main__":
    key = jax.random.PRNGKey(0)
    k1, k2, k3 = jax.random.split(key, 3)
    B, C, O, HW = 2, 4, 6, 16      # O divisible by 3 (three transform groups)

    x = jax.random.normal(k1, (B, C, HW, HW), dtype=jnp.float32)
    weight = 0.1 * jax.random.normal(k2, (O, C, 4, 4), dtype=jnp.float32)
    bias = 0.1 * jax.random.normal(k3, (1, O, 1, 1), dtype=jnp.float32)

    out = jax.jit(mult_layer3_forward)(x, weight, bias)
    out = jax.block_until_ready(out)

    ref = mult_layer3_reference(x, weight, bias)
    assert out.shape == (B, O, HW, HW)
    np.testing.assert_allclose(np.asarray(out), np.asarray(ref),
                               rtol=1e-4, atol=1e-4)
    print("KERNEL_OK")
</pallas_src>

<mosaic_0001>
module attributes {stable_mosaic.version = 11 : i64} {
  func.func @_mult_kernel(%arg0: i32, %arg1: i32, %arg2: memref<1x64x128xf32, #tpu.memory_space<vmem>>, %arg3: memref<24x64xf32, #tpu.memory_space<vmem>>, %arg4: memref<24x1xf32, #tpu.memory_space<vmem>>, %arg5: memref<1x24x128xf32, #tpu.memory_space<vmem>>) attributes {dimension_semantics = [#tpu.dimension_semantics<parallel>, #tpu.dimension_semantics<parallel>], iteration_bounds = array<i64: 2, 1>, scalar_prefetch = 0 : i64, scratch_operands = 0 : i64, tpu.core_type = #tpu.core_type<tc>, window_params = [{transform_indices = @transform_0, window_bounds = array<i64: 1, 64, 128>}, {pipeline_mode = #tpu.pipeline_mode<synchronous>, transform_indices = @transform_1, window_bounds = array<i64: 24, 64>}, {pipeline_mode = #tpu.pipeline_mode<synchronous>, transform_indices = @transform_2, window_bounds = array<i64: 24, 1>}, {transform_indices = @transform_3, window_bounds = array<i64: 1, 24, 128>}]} {
    %c0 = arith.constant 0 : index
    %c0_0 = arith.constant 0 : index
    %0 = vector.load %arg3[%c0, %c0_0] : memref<24x64xf32, #tpu.memory_space<vmem>>, vector<24x64xf32>
    %c0_1 = arith.constant 0 : index
    %c0_2 = arith.constant 0 : index
    %c0_3 = arith.constant 0 : index
    %1 = vector.load %arg2[%c0_1, %c0_2, %c0_3] : memref<1x64x128xf32, #tpu.memory_space<vmem>>, vector<1x64x128xf32>
    %2 = vector.shape_cast %1 : vector<1x64x128xf32> to vector<64x128xf32>
    %cst = arith.constant dense<0.000000e+00> : vector<24x128xf32>
    %3 = tpu.matmul %0, %2, %cst {dimension_numbers = #tpu.dot_dimension_numbers<[1], [0], [0], [1], [0, 0, 1, 1], [], []>} : vector<24x64xf32>, vector<64x128xf32>, vector<24x128xf32> -> vector<24x128xf32>
    %c0_4 = arith.constant 0 : index
    %c0_5 = arith.constant 0 : index
    %4 = vector.load %arg4[%c0_4, %c0_5] : memref<24x1xf32, #tpu.memory_space<vmem>>, vector<24x1xf32>
    %5 = vector.broadcast %4 : vector<24x1xf32> to vector<24x128xf32>
    %6 = arith.addf %3, %5 : vector<24x128xf32>
    %c0_6 = arith.constant 0 : index
    %c0_7 = arith.constant 0 : index
    %c0_8 = arith.constant 0 : index
    %7 = vector.load %arg5[%c0_6, %c0_7, %c0_8] : memref<1x24x128xf32, #tpu.memory_space<vmem>>, vector<1x24x128xf32>
    %8 = vector.shape_cast %7 : vector<1x24x128xf32> to vector<24x128xf32>
    %9 = vector.shape_cast %6 : vector<24x128xf32> to vector<1x24x128xf32>
    tpu.vector_store %arg5[%c0_6, %c0_7, %c0_8], %9 {strides = array<i32>} : memref<1x24x128xf32, #tpu.memory_space<vmem>>, vector<1x24x128xf32>,
    return
  }
  func.func @transform_0(%arg0: i32, %arg1: i32) -> (i32, i32, i32) {
    %c0_i32 = arith.constant 0 : i32
    %c0_i32_0 = arith.constant 0 : i32
    return %arg0, %c0_i32, %arg1 : i32, i32, i32
  }
  func.func @transform_1(%arg0: i32, %arg1: i32) -> (i32, i32) {
    %c0_i32 = arith.constant 0 : i32
    %c0_i32_0 = arith.constant 0 : i32
    %c0_i32_1 = arith.constant 0 : i32
    return %c0_i32, %c0_i32_0 : i32, i32
  }
  func.func @transform_2(%arg0: i32, %arg1: i32) -> (i32, i32) {
    %c0_i32 = arith.constant 0 : i32
    %c0_i32_0 = arith.constant 0 : i32
    %c0_i32_1 = arith.constant 0 : i32
    return %c0_i32, %c0_i32_0 : i32, i32
  }
  func.func @transform_3(%arg0: i32, %arg1: i32) -> (i32, i32, i32) {
    %c0_i32 = arith.constant 0 : i32
    %c0_i32_0 = arith.constant 0 : i32
    return %arg0, %c0_i32, %arg1 : i32, i32, i32
  }
}

</mosaic_0001>

<bundles_post_ra>
// kernel: mult_layer3_forward.1
= control target key start
LH: loop header
LB: loop body
LE: loop exit
PB: predicated region body
PF: predicated region fallthrough
CT: control target
= control target key end

     0   :  { %s456_s12 = smov 0   ;;  %s458_s13 = smov 0   ;;  %s511_s0 = inlined_call_operand.vmem [shape: f32[2,64,128], index: 0, kind: input, shape index: {}]   ;;  %s512_s1 = inlined_call_operand.vmem [shape: f32[24,64], index: 1, kind: input, shape index: {}]   ;;  %s513_s2 = inlined_call_operand.vmem [shape: f32[24,1], index: 2, kind: input, shape index: {}]   ;;  %s514_s3 = inlined_call_operand.vmem [shape: f32[2,24,128], index: 3, kind: output, shape index: {}]  }
   0x1   :  { %s460_s14 = smov 0  }
   0x2 LB: > { %s25_s15 = sadd.s32 1, %s429_s13  ;;  %p357_p0 = scmp.ge.s32.totalorder %s433_s14, 1  ;;  %s433_s14 = sphi %s460_s14, %s13_s14   ;;  %s429_s13 = sphi %s458_s13, %s516_s13   ;;  %s425_s12 = sphi %s456_s12, %s515_s12  }
   0x3   : > { %p27_p1 = scmp.ge.s32.totalorder %s25_s15, 2  ;;  %p156_p2 = scmp.lt.s32.totalorder %s433_s14, 3 }
   0x5   : > { %s518_s15 = smov (%p27_p1, %s25_s15), 0  ;;  %p157_p3 = pnand %p357_p0, %p156_p2 }
   0x6   : > { %p186_p4 = scmp.lt.s32.totalorder (!%p157_p3), %s425_s12, 1 }
   0x7   : > { %160 = sbr.rel (%p157_p3) target bundleno = 168 (0xa8), region = 32 }
   0xc   : > { %v435_v0 = vmov 0   ;;  %v213_v1 = vld [vmem:[%s513_s2] sm:$0xff]  ;;  %v215_v2 = vld [vmem:[%s513_s2 + $0x10] sm:$0xff]  ;;  %s520_s12 = smov (!%p186_p4, %s425_s12), 1  ;;  %v214_v5 = vld [vmem:[%s513_s2 + $0x8] sm:$0xff]  ;;  %vm231_vm0 = vcmask 523264  }
   0xd   : > { %409 = vset.pattern.permute.xlu0 %v435_v0  ;;  %410 = vset.pattern.permute.xlu1 %v435_v0  ;;  %s366_s20 = sshll.u32 %s520_s12, 6  ;;  %v202_v12 = vld [vmem:[%s512_s1] sm:$0xff]  ;;  %v203_v13 = vld [vmem:[%s512_s1 + $0x8] sm:$0xff]  ;;  %v204_v14 = vld [vmem:[%s512_s1 + $0x10] sm:$0xff]  ;;  %s383_s5 = smul.u32 24, %s520_s12 }
   0xe   : > { %218 = vperm.xlu0 %409, %v213_v1   ;;  %228 = vperm.xlu1 %410, %v215_v2   ;;  %s193_s23 = scalar_lea.vmem %s511_s0, %s366_s20 }
   0xf   : > { %v212_v3 = vld [vmem:[%s193_s23 + $0x38] sm:$0xff]  ;;  %v211_v4 = vld [vmem:[%s193_s23 + $0x30] sm:$0xff]  ;;  %v210_v6 = vld [vmem:[%s193_s23 + $0x28] sm:$0xff]  ;;  %s201_s8 = scalar_lea.vmem %s514_s3, %s383_s5 }
  0x10   : > { %249 = vmatpush.msra.mxu0 %v212_v3  ;;  %367 = vmatpush.msra.mxu1 %v212_v3  ;;  %v209_v7 = vld [vmem:[%s193_s23 + $0x20] sm:$0xff]  ;;  %v208_v8 = vld [vmem:[%s193_s23 + $0x18] sm:$0xff]  ;;  %v207_v9 = vld [vmem:[%s193_s23 + $0x10] sm:$0xff] }
  0x11   : > { %368 = vmatpush.msra.mxu2 %v212_v3  ;;  %v206_v10 = vld [vmem:[%s193_s23 + $0x8] sm:$0xff]  ;;  %v205_v11 = vld [vmem:[%s193_s23] sm:$0xff] }
  0x12   : > { %250 = vmatpush.msra.mxu0 %v211_v4  ;;  %369 = vmatpush.msra.mxu1 %v211_v4 }
  0x13   : > { %370 = vmatpush.msra.mxu2 %v211_v4 }
  0x14   : > { %251 = vmatpush.msra.mxu0 %v210_v6  ;;  %371 = vmatpush.msra.mxu1 %v210_v6 }
  0x15   : > { %372 = vmatpush.msra.mxu2 %v210_v6 }
  0x16   : > { %223 = vperm.xlu0 %409, %v214_v5   ;;  %252 = vmatpush.msra.mxu0 %v209_v7 }
  0x17   : > { %373 = vmatpush.msra.mxu1 %v209_v7  ;;  %374 = vmatpush.msra.mxu2 %v209_v7 }
  0x18   : > { %253 = vmatpush.msra.mxu0 %v208_v8 }
  0x19   : > { %375 = vmatpush.msra.mxu1 %v208_v8  ;;  %376 = vmatpush.msra.mxu2 %v208_v8 }
  0x1a   : > { %254 = vmatpush.msra.mxu0 %v207_v9 }
  0x1b   : > { %377 = vmatpush.msra.mxu1 %v207_v9  ;;  %378 = vmatpush.msra.mxu2 %v207_v9 }
  0x1c   : > { %255 = vmatpush.msra.mxu0 %v206_v10 }
  0x1d   : > { %379 = vmatpush.msra.mxu1 %v206_v10  ;;  %380 = vmatpush.msra.mxu2 %v206_v10 }
  0x1e   : > { %256 = vmatpush.msra.mxu0 %v205_v11 }
  0x1f   : > { %381 = vmatpush.msra.mxu1 %v205_v11  ;;  %382 = vmatpush.msra.mxu2 %v205_v11 }
  0x20   : > { %361 = vmatmul.msk.f32.vlgmr.msra.gmra.mxu0 %vm231_vm0, %v202_v12  ;;  %362 = vmatmul.msk.f32.vlgmr.msra.gmra.mxu1 %vm231_vm0, %v203_v13 }
  0x21   : > { %363 = vmatmul.msk.f32.vlgmr.msra.gmra.mxu2 %vm231_vm0, %v204_v14 }
  0x80   : > { %v219_v15 = vpop.permute.xlu0 %218  ;;  %v229_v21 = vpop.permute.xlu1 %228 }
  0x88   : > { %v224_v17 = vpop.permute.xlu0 %223 }
  0x9d   : > { %v258_v16 = vpop.f32.mrf.mxu0  ;;  %v261_v19 = vpop.f32.mrf.mxu1 }
  0x9e   : > { %v259_v18 = vadd.f32 %v258_v16, %v219_v15  ;;  %v262_v20 = vadd.f32 %v261_v19, %v224_v17 }
  0xa0   : > { %267 = vst [vmem:[%s201_s8] sm:$0xff] %v259_v18 }
  0xa1   : > { %268 = vst [vmem:[%s201_s8 + $0x8] sm:$0xff] %v262_v20 }
  0xa4   : > { %v264_v22 = vpop.f32.mrf.mxu2 }
  0xa5   : > { %v265_v23 = vadd.f32 %v264_v22, %v229_v21 }
  0xa7   : > { %269 = vst [vmem:[%s201_s8 + $0x10] sm:$0xff] %v265_v23 }
  0xa8 PF: > { %s13_s14 = sadd.s32 1, %s433_s14   ;;  %s515_s12 = smov %s429_s13 }
  0xa9   : > { %p10_p5 = scmp.ge.s32.totalorder %s13_s14, 4   ;;  %s516_s13 = smov %s518_s15 }
  0xab   :  { %12 = sbr.rel (!%p10_p5) target bundleno = 2 (0x2), region = 62 }

</bundles_post_ra>
